<compile_context>
chip_gen: v7x
topology: tpu7x:2x2x1
jax: 0.10.0
libtpu: 0.0.40
codegen_flags: <defaults>
</compile_context>

<pallas_src>
import functools

import jax
import jax.numpy as jnp
from jax.experimental import pallas as pl
from jax.experimental.pallas import tpu as pltpu


def _round_up(x, m):
    return ((x + m - 1) // m) * m


# Keep the whole weight resident in VMEM up to this size; beyond it, fall
# back to E-tiling (weight tile resident across the inner M loop).
_WEIGHT_RESIDENT_BYTES = 12 * 1024 * 1024
# Double-buffered streaming-tile budget (patches + output), conservative for
# v7x's 64 MiB physical / 32 MiB scoped-default VMEM.
_STREAM_TILE_BUDGET = 16 * 1024 * 1024


def _projection_kernel(x_ref, w_ref, b_ref, o_ref):
    # x_ref: (TM, K) patches, w_ref: (K, E_blk) weight (resident),
    # b_ref: (1, E_blk) f32 bias, o_ref: (TM, E_blk) output.
    acc = jnp.dot(x_ref[...], w_ref[...], preferred_element_type=jnp.float32)
    o_ref[...] = (acc + b_ref[...]).astype(o_ref.dtype)


def prepare_params(weight, bias, compute_dtype=jnp.bfloat16):
    """One-time parameter prep (do NOT pay this per forward call).

    weight: (E, K) in PyTorch nn.Linear convention -> returns (K, E) in the
    compute dtype, plus a (1, E) f32 bias.
    """
    w_t = jnp.asarray(weight).T.astype(compute_dtype)      # (K, E)
    b2d = jnp.asarray(bias, jnp.float32).reshape(1, -1)    # (1, E)
    return w_t, b2d


def _choose_m_tile(m, k, e_blk, in_itemsize, out_itemsize):
    """Pick the M tile: biggest that fits the VMEM stream budget, preferring
    tiles that divide M exactly (no ragged edge)."""
    per_row = 2 * k * in_itemsize + 2 * e_blk * out_itemsize  # 2x: double buf
    cap = max(8, _STREAM_TILE_BUDGET // max(per_row, 1))
    if m <= min(cap, 1024):
        return m                      # single full-extent block, always legal
    for t in (1024, 512, 256, 128):
        if t <= cap and m % t == 0:
            return t
    # Ragged edge: Pallas masks the partial last block's writes.
    return min(512, max(8, (cap // 8) * 8))


@functools.partial(jax.jit, static_argnames=("patch_size", "out_dtype"))
def patch_embedding_forward(x, w_t, b2d, patch_size, out_dtype=None):
    """Forward pass of PatchEmbedding.

    Args:
      x:     (B, C, H, W) float32, NCHW like the PyTorch module.
      w_t:   (K, E) weight, already transposed / cast via prepare_params.
      b2d:   (1, E) float32 bias.
      patch_size: int patch side.
      out_dtype:  output dtype; defaults to w_t.dtype (bf16 on the fast path).

    Returns:
      (B, N, E) with N = (H//p) * (W//p).
    """
    B, C, H, W = x.shape
    p = patch_size
    h, w = H // p, W // p
    N = h * w
    K = p * p * C
    E = w_t.shape[1]
    compute_dtype = w_t.dtype
    if out_dtype is None:
        out_dtype = compute_dtype

    in_is = jnp.dtype(compute_dtype).itemsize
    out_is = jnp.dtype(out_dtype).itemsize

    # einops 'b c (h p1) (w p2) -> b (h w) (p1 p2 c)'.  Cast FIRST so this
    # full-HBM-copy rearrange moves compute-dtype (2-byte) elements.
    xc = x.astype(compute_dtype)
    patches = xc.reshape(B, C, h, p, w, p)
    patches = jnp.transpose(patches, (0, 2, 4, 3, 5, 1))    # (B,h,w,p1,p2,C)
    patches = patches.reshape(B * N, K)                     # (M, K)
    M = B * N

    weight_bytes = K * E * in_is
    if weight_bytes <= _WEIGHT_RESIDENT_BYTES:
        # ---- primary path: 1-D grid over M, whole weight resident ----
        TM = _choose_m_tile(M, K, E, in_is, out_is)
        grid = (pl.cdiv(M, TM),)
        in_specs = [
            pl.BlockSpec((TM, K), lambda i: (i, 0)),
            pl.BlockSpec((K, E), lambda i: (0, 0)),    # resident across steps
            pl.BlockSpec((1, E), lambda i: (0, 0)),
        ]
        out_specs = pl.BlockSpec((TM, E), lambda i: (i, 0))
        dim_sem = ("parallel",)
        patch_reads = 1
        e_blk = E
    else:
        # ---- fallback: E-tiled (E outer so the weight tile stays resident
        # across the inner M loop); patches are re-read E//TE times ----
        TE = 256 if E % 256 == 0 else (128 if E % 128 == 0 else E)
        TM = _choose_m_tile(M, K, TE, in_is, out_is)
        grid = (E // TE, pl.cdiv(M, TM))
        in_specs = [
            pl.BlockSpec((TM, K), lambda i_e, i_m: (i_m, 0)),
            pl.BlockSpec((K, TE), lambda i_e, i_m: (0, i_e)),
            pl.BlockSpec((1, TE), lambda i_e, i_m: (0, i_e)),
        ]
        out_specs = pl.BlockSpec((TM, TE), lambda i_e, i_m: (i_m, i_e))
        dim_sem = ("parallel", "parallel")
        patch_reads = E // TE
        e_blk = TE

    # Advisory cost: actual single-pass traffic (no pad copies, out_dtype out).
    cost = pl.CostEstimate(
        flops=2 * M * K * E,
        transcendentals=0,
        bytes_accessed=(patch_reads * M * K * in_is    # patches
                        + K * E * in_is                # weight
                        + E * 4                        # bias
                        + M * E * out_is),             # output
    )

    # Explicit VMEM budget (double-buffered streaming tiles + resident weight),
    # capped well under v7x's 64 MiB physical VMEM.
    vmem_needed = (2 * TM * K * in_is + 2 * TM * e_blk * out_is
                   + K * e_blk * in_is + e_blk * 4)
    vmem_limit = int(min(48 * 2**20, max(32 * 2**20, int(vmem_needed * 1.5))))

    out = pl.pallas_call(
        _projection_kernel,
        out_shape=jax.ShapeDtypeStruct((M, E), out_dtype),
        grid_spec=pltpu.PrefetchScalarGridSpec(
            num_scalar_prefetch=0,
            grid=grid,
            in_specs=in_specs,
            out_specs=out_specs,
        ),
        compiler_params=pltpu.CompilerParams(
            dimension_semantics=dim_sem,
            vmem_limit_bytes=vmem_limit),
        cost_estimate=cost,
    )(patches, w_t, b2d)

    return out.reshape(B, N, E)


def _reference(x, weight, bias, p, compute_dtype=None):
    """Plain-JAX reference matching the PyTorch module semantics."""
    B, C, H, W = x.shape
    h, w = H // p, W // p
    K = p * p * C
    patches = x.reshape(B, C, h, p, w, p)
    patches = jnp.transpose(patches, (0, 2, 4, 3, 5, 1)).reshape(B, h * w, K)
    wt = weight
    if compute_dtype is not None:
        patches = patches.astype(compute_dtype).astype(jnp.float32)
        wt = wt.astype(compute_dtype).astype(jnp.float32)
    return patches @ wt.T + bias


if __name__ == "__main__":
    key = jax.random.PRNGKey(0)

    # ---- Test 1: small, module-consistent shapes; bit-faithful f32 path ----
    # B=2, C=3, img=32, patch=16 (Config.patch_size) -> N=4, K=768,
    # emb=256 (Config.emb_size).  Single grid step, full-extent blocks.
    B, C, img, p, emb = 2, 3, 32, 16, 256
    K = p * p * C
    k1, k2, k3, key = jax.random.split(key, 4)
    x = jax.random.normal(k1, (B, C, img, img), dtype=jnp.float32)
    bound = 1.0 / (K ** 0.5)
    weight = jax.random.uniform(k2, (emb, K), minval=-bound, maxval=bound,
                                dtype=jnp.float32)
    bias = jax.random.uniform(k3, (emb,), minval=-bound, maxval=bound,
                              dtype=jnp.float32)

    w_t, b2d = prepare_params(weight, bias, compute_dtype=jnp.float32)
    out = patch_embedding_forward(x, w_t, b2d, p, out_dtype=jnp.float32)
    out = jax.block_until_ready(out)
    ref = _reference(x, weight, bias, p)
    assert out.shape == (B, (img // p) ** 2, emb)
    assert jnp.allclose(out, ref, atol=1e-4, rtol=1e-4)

    # ---- Test 2: bf16 fast path with real M tiling (grid = (2,)) ----
    # B=8, C=3, img=256, patch=16 -> M = 8*256 = 2048, TM=1024, K=768, E=256.
    B2, C2, img2, p2, emb2 = 8, 3, 256, 16, 256
    K2 = p2 * p2 * C2
    k1, k2, k3, key = jax.random.split(key, 4)
    x2 = jax.random.normal(k1, (B2, C2, img2, img2), dtype=jnp.float32)
    bound2 = 1.0 / (K2 ** 0.5)
    weight2 = jax.random.uniform(k2, (emb2, K2), minval=-bound2, maxval=bound2,
                                 dtype=jnp.float32)
    bias2 = jax.random.uniform(k3, (emb2,), minval=-bound2, maxval=bound2,
                               dtype=jnp.float32)

    w_t2, b2d2 = prepare_params(weight2, bias2, compute_dtype=jnp.bfloat16)
    out2 = patch_embedding_forward(x2, w_t2, b2d2, p2)     # bf16 output
    out2 = jax.block_until_ready(out2)
    assert out2.dtype == jnp.bfloat16
    ref2 = _reference(x2, weight2, bias2, p2, compute_dtype=jnp.bfloat16)
    assert out2.shape == (B2, (img2 // p2) ** 2, emb2)
    assert jnp.allclose(out2.astype(jnp.float32), ref2, atol=2e-2, rtol=2e-2)

    print("KERNEL_OK")
</pallas_src>

<mosaic_0001>
module attributes {stable_mosaic.version = 11 : i64} {
  func.func @_projection_kernel(%arg0: i32, %arg1: memref<8x768xf32, #tpu.memory_space<vmem>>, %arg2: memref<768x256xf32, #tpu.memory_space<vmem>>, %arg3: memref<1x256xf32, #tpu.memory_space<vmem>>, %arg4: memref<8x256xf32, #tpu.memory_space<vmem>>) attributes {dimension_semantics = [#tpu.dimension_semantics<parallel>], iteration_bounds = array<i64: 1>, scalar_prefetch = 0 : i64, scratch_operands = 0 : i64, tpu.core_type = #tpu.core_type<tc>, window_params = [{transform_indices = @transform_0, window_bounds = array<i64: 8, 768>}, {pipeline_mode = #tpu.pipeline_mode<synchronous>, transform_indices = @transform_1, window_bounds = array<i64: 768, 256>}, {pipeline_mode = #tpu.pipeline_mode<synchronous>, transform_indices = @transform_2, window_bounds = array<i64: 1, 256>}, {transform_indices = @transform_3, window_bounds = array<i64: 8, 256>}]} {
    %c0 = arith.constant 0 : index
    %c0_0 = arith.constant 0 : index
    %0 = vector.load %arg1[%c0, %c0_0] : memref<8x768xf32, #tpu.memory_space<vmem>>, vector<8x768xf32>
    %c0_1 = arith.constant 0 : index
    %c0_2 = arith.constant 0 : index
    %1 = vector.load %arg2[%c0_1, %c0_2] : memref<768x256xf32, #tpu.memory_space<vmem>>, vector<768x256xf32>
    %cst = arith.constant dense<0.000000e+00> : vector<8x256xf32>
    %2 = tpu.matmul %0, %1, %cst {dimension_numbers = #tpu.dot_dimension_numbers<[1], [0], [0], [1], [0, 0, 1, 1], [], []>} : vector<8x768xf32>, vector<768x256xf32>, vector<8x256xf32> -> vector<8x256xf32>
    %c0_3 = arith.constant 0 : index
    %c0_4 = arith.constant 0 : index
    %3 = vector.load %arg3[%c0_3, %c0_4] : memref<1x256xf32, #tpu.memory_space<vmem>>, vector<1x256xf32>
    %4 = vector.broadcast %3 : vector<1x256xf32> to vector<8x256xf32>
    %5 = arith.addf %2, %4 : vector<8x256xf32>
    %c0_5 = arith.constant 0 : index
    %c0_6 = arith.constant 0 : index
    %6 = vector.load %arg4[%c0_5, %c0_6] : memref<8x256xf32, #tpu.memory_space<vmem>>, vector<8x256xf32>
    tpu.vector_store %arg4[%c0_5, %c0_6], %5 {strides = array<i32>} : memref<8x256xf32, #tpu.memory_space<vmem>>, vector<8x256xf32>,
    return
  }
  func.func @transform_0(%arg0: i32) -> (i32, i32) {
    %c0_i32 = arith.constant 0 : i32
    %c0_i32_0 = arith.constant 0 : i32
    return %arg0, %c0_i32 : i32, i32
  }
  func.func @transform_1(%arg0: i32) -> (i32, i32) {
    %c0_i32 = arith.constant 0 : i32
    %c0_i32_0 = arith.constant 0 : i32
    %c0_i32_1 = arith.constant 0 : i32
    return %c0_i32, %c0_i32_0 : i32, i32
  }
  func.func @transform_2(%arg0: i32) -> (i32, i32) {
    %c0_i32 = arith.constant 0 : i32
    %c0_i32_0 = arith.constant 0 : i32
    %c0_i32_1 = arith.constant 0 : i32
    return %c0_i32, %c0_i32_0 : i32, i32
  }
  func.func @transform_3(%arg0: i32) -> (i32, i32) {
    %c0_i32 = arith.constant 0 : i32
    %c0_i32_0 = arith.constant 0 : i32
    return %arg0, %c0_i32 : i32, i32
  }
}

</mosaic_0001>

<bundles_post_ra>
// kernel: patch_embedding_forward.1
= control target key start
LH: loop header
LB: loop body
LE: loop exit
PB: predicated region body
PF: predicated region fallthrough
CT: control target
= control target key end

     0   :  { %s1264_s1 = inlined_call_operand.vmem [shape: f32[768,256], index: 1, kind: input, shape index: {}]   ;;  %s1265_s0 = inlined_call_operand.vmem [shape: f32[8,768], index: 0, kind: input, shape index: {}]   ;;  %s1266_s2 = inlined_call_operand.vmem [shape: f32[1,256], index: 2, kind: input, shape index: {}]   ;;  %s1267_s3 = inlined_call_operand.vmem [shape: f32[8,256], index: 3, kind: output, shape index: {}]  }
   0x1   :  { %v85_v0 = vld [vmem:[%s1264_s1 + $0x208] sm:$0xff]  ;;  %v87_v1 = vld [vmem:[%s1264_s1 + $0x218] sm:$0xff]  ;;  %v84_v2 = vld [vmem:[%s1264_s1 + $0x200] sm:$0xff] }
   0x2   :  { %v507_v3 = vpack.c.bf16 %v87_v1, %v85_v0  ;;  %v86_v4 = vld [vmem:[%s1264_s1 + $0x210] sm:$0xff]  ;;  %v89_v5 = vld [vmem:[%s1264_s1 + $0x228] sm:$0xff]  ;;  %v91_v6 = vld [vmem:[%s1264_s1 + $0x238] sm:$0xff] }
   0x3   :  { %v509_v7 = vpack.c.bf16 %v86_v4, %v84_v2  ;;  %v511_v8 = vpack.c.bf16 %v91_v6, %v89_v5  ;;  %v88_v9 = vld [vmem:[%s1264_s1 + $0x220] sm:$0xff]  ;;  %v90_v10 = vld [vmem:[%s1264_s1 + $0x230] sm:$0xff]  ;;  %v93_v11 = vld [vmem:[%s1264_s1 + $0x248] sm:$0xff] }
   0x4   :  { %508 = vmatprep.subr.bf16.mxu0 %v507_v3  ;;  %v95_v12 = vld [vmem:[%s1264_s1 + $0x258] sm:$0xff]  ;;  %v513_v13 = vpack.c.bf16 %v90_v10, %v88_v9  ;;  %v92_v15 = vld [vmem:[%s1264_s1 + $0x240] sm:$0xff]  ;;  %v94_v16 = vld [vmem:[%s1264_s1 + $0x250] sm:$0xff] }
   0x5   :  { %510 = vmatpush1.bf16.msra.mxu0 %v509_v7  ;;  %v515_v14 = vpack.c.bf16 %v95_v12, %v93_v11  ;;  %v97_v17 = vld [vmem:[%s1264_s1 + $0x268] sm:$0xff]  ;;  %v99_v18 = vld [vmem:[%s1264_s1 + $0x278] sm:$0xff]  ;;  %v517_v19 = vpack.c.bf16 %v94_v16, %v92_v15  ;;  %v96_v21 = vld [vmem:[%s1264_s1 + $0x260] sm:$0xff] }
   0x6   :  { %512 = vmatprep.subr.bf16.mxu0 %v511_v8  ;;  %v519_v20 = vpack.c.bf16 %v99_v18, %v97_v17  ;;  %v98_v22 = vld [vmem:[%s1264_s1 + $0x270] sm:$0xff]  ;;  %v101_v23 = vld [vmem:[%s1264_s1 + $0x288] sm:$0xff]  ;;  %v103_v24 = vld [vmem:[%s1264_s1 + $0x298] sm:$0xff] }
   0x7   :  { %v521_v25 = vpack.c.bf16 %v98_v22, %v96_v21  ;;  %v523_v26 = vpack.c.bf16 %v103_v24, %v101_v23  ;;  %v100_v27 = vld [vmem:[%s1264_s1 + $0x280] sm:$0xff]  ;;  %v102_v28 = vld [vmem:[%s1264_s1 + $0x290] sm:$0xff]  ;;  %v105_v29 = vld [vmem:[%s1264_s1 + $0x2a8] sm:$0xff] }
   0x8   :  { %v107_v30 = vld [vmem:[%s1264_s1 + $0x2b8] sm:$0xff]  ;;  %v525_v31 = vpack.c.bf16 %v102_v28, %v100_v27  ;;  %v104_v33 = vld [vmem:[%s1264_s1 + $0x2a0] sm:$0xff]  ;;  %v106_v34 = vld [vmem:[%s1264_s1 + $0x2b0] sm:$0xff] }
   0x9   :  { %514 = vmatpush1.bf16.msra.mxu0 %v513_v13  ;;  %v527_v32 = vpack.c.bf16 %v107_v30, %v105_v29  ;;  %v109_v35 = vld [vmem:[%s1264_s1 + $0x2c8] sm:$0xff]  ;;  %v111_v36 = vld [vmem:[%s1264_s1 + $0x2d8] sm:$0xff]  ;;  %v529_v37 = vpack.c.bf16 %v106_v34, %v104_v33  ;;  %v108_v38 = vld [vmem:[%s1264_s1 + $0x2c0] sm:$0xff] }
   0xa   :  { %516 = vmatprep.subr.bf16.mxu0 %v515_v14  ;;  %v110_v39 = vld [vmem:[%s1264_s1 + $0x2d0] sm:$0xff]  ;;  %v21_v40 = vld [vmem:[%s1264_s1 + $0x8] sm:$0xff]  ;;  %v531_v41 = vpack.c.bf16 %v111_v36, %v109_v35  ;;  %v115_v43 = vld [vmem:[%s1264_s1 + $0x2f8] sm:$0xff] }
   0xb   :  { %v113_v42 = vld [vmem:[%s1264_s1 + $0x2e8] sm:$0xff]  ;;  %v23_v44 = vld [vmem:[%s1264_s1 + $0x18] sm:$0xff]  ;;  %v20_v46 = vld [vmem:[%s1264_s1] sm:$0xff]  ;;  %v533_v51 = vpack.c.bf16 %v110_v39, %v108_v38 }
   0xc   :  { %v443_v45 = vpack.c.bf16 %v23_v44, %v21_v40  ;;  %v22_v47 = vld [vmem:[%s1264_s1 + $0x10] sm:$0xff]  ;;  %v17_v48 = vld [vmem:[%s1265_s0 + $0x18] sm:$0xff]  ;;  %v25_v50 = vld [vmem:[%s1264_s1 + $0x28] sm:$0xff]  ;;  %v535_v54 = vpack.c.bf16 %v115_v43, %v113_v42 }
   0xd   :  { %518 = vmatpush1.bf16.msra.mxu0 %v517_v19  ;;  %v445_v49 = vpack.c.bf16 %v22_v47, %v20_v46  ;;  %359 = vmatprep.mubr.f32.mxu0 %v17_v48  ;;  %v112_v52 = vld [vmem:[%s1264_s1 + $0x2e0] sm:$0xff]  ;;  %v27_v53 = vld [vmem:[%s1264_s1 + $0x38] sm:$0xff]  ;;  %v114_v55 = vld [vmem:[%s1264_s1 + $0x2f0] sm:$0xff] }
   0xe   :  { %520 = vmatprep.subr.bf16.mxu0 %v519_v20  ;;  %444 = vmatprep.subr.bf16.mxu1 %v443_v45  ;;  %v447_v56 = vpack.c.bf16 %v27_v53, %v25_v50  ;;  %v24_v57 = vld [vmem:[%s1264_s1 + $0x20] sm:$0xff]  ;;  %v26_v58 = vld [vmem:[%s1264_s1 + $0x30] sm:$0xff]  ;;  %v117_v59 = vld [vmem:[%s1264_s1 + $0x308] sm:$0xff]  ;;  %v537_v0 = vpack.c.bf16 %v114_v55, %v112_v52 }
   0xf   :  { %446 = vmatpush1.bf16.msra.mxu1 %v445_v49  ;;  %v119_v60 = vld [vmem:[%s1264_s1 + $0x318] sm:$0xff]  ;;  %v449_v61 = vpack.c.bf16 %v26_v58, %v24_v57  ;;  %v29_v62 = vld [vmem:[%s1264_s1 + $0x48] sm:$0xff]  ;;  %v116_v1 = vld [vmem:[%s1264_s1 + $0x300] sm:$0xff] }
  0x10   :  { %448 = vmatprep.subr.bf16.mxu1 %v447_v56  ;;  %v31_v63 = vld [vmem:[%s1264_s1 + $0x58] sm:$0xff]  ;;  %v28_v3 = vld [vmem:[%s1264_s1 + $0x40] sm:$0xff]  ;;  %v30_v4 = vld [vmem:[%s1264_s1 + $0x50] sm:$0xff]  ;;  %v539_v5 = vpack.c.bf16 %v119_v60, %v117_v59 }
  0x11   :  { %522 = vmatpush1.bf16.msra.mxu0 %v521_v25  ;;  %v451_v2 = vpack.c.bf16 %v31_v63, %v29_v62  ;;  %v118_v6 = vld [vmem:[%s1264_s1 + $0x310] sm:$0xff]  ;;  %v453_v7 = vpack.c.bf16 %v30_v4, %v28_v3  ;;  %v33_v8 = vld [vmem:[%s1264_s1 + $0x68] sm:$0xff]  ;;  %v35_v9 = vld [vmem:[%s1264_s1 + $0x78] sm:$0xff] }
  0x12   :  { %524 = vmatprep.subr.bf16.mxu0 %v523_v26  ;;  %v121_v10 = vld [vmem:[%s1264_s1 + $0x328] sm:$0xff]  ;;  %v123_v11 = vld [vmem:[%s1264_s1 + $0x338] sm:$0xff]  ;;  %v455_v12 = vpack.c.bf16 %v35_v9, %v33_v8  ;;  %v32_v13 = vld [vmem:[%s1264_s1 + $0x60] sm:$0xff]  ;;  %v541_v15 = vpack.c.bf16 %v118_v6, %v116_v1 }
  0x13   :  { %450 = vmatpush1.bf16.msra.mxu1 %v449_v61  ;;  %v34_v14 = vld [vmem:[%s1264_s1 + $0x70] sm:$0xff]  ;;  %v37_v16 = vld [vmem:[%s1264_s1 + $0x88] sm:$0xff]  ;;  %v39_v17 = vld [vmem:[%s1264_s1 + $0x98] sm:$0xff]  ;;  %v543_v18 = vpack.c.bf16 %v123_v11, %v121_v10 }
  0x14   :  { %452 = vmatprep.subr.bf16.mxu1 %v451_v2  ;;  %v120_v19 = vld [vmem:[%s1264_s1 + $0x320] sm:$0xff]  ;;  %v122_v20 = vld [vmem:[%s1264_s1 + $0x330] sm:$0xff]  ;;  %v125_v21 = vld [vmem:[%s1264_s1 + $0x348] sm:$0xff]  ;;  %v457_v22 = vpack.c.bf16 %v34_v14, %v32_v13  ;;  %v459_v24 = vpack.c.bf16 %v39_v17, %v37_v16 }
  0x15   :  { %526 = vmatpush1.bf16.msra.mxu0 %v525_v31  ;;  %v127_v23 = vld [vmem:[%s1264_s1 + $0x358] sm:$0xff]  ;;  %v36_v25 = vld [vmem:[%s1264_s1 + $0x80] sm:$0xff]  ;;  %v38_v26 = vld [vmem:[%s1264_s1 + $0x90] sm:$0xff]  ;;  %v545_v29 = vpack.c.bf16 %v122_v20, %v120_v19 }
  0x16   :  { %528 = vmatprep.subr.bf16.mxu0 %v527_v32  ;;  %v41_v27 = vld [vmem:[%s1264_s1 + $0xa8] sm:$0xff]  ;;  %v43_v28 = vld [vmem:[%s1264_s1 + $0xb8] sm:$0xff]  ;;  %v547_v30 = vpack.c.bf16 %v127_v23, %v125_v21  ;;  %v124_v31 = vld [vmem:[%s1264_s1 + $0x340] sm:$0xff]  ;;  %v461_v34 = vpack.c.bf16 %v38_v26, %v36_v25 }
  0x17   :  { %454 = vmatpush1.bf16.msra.mxu1 %v453_v7  ;;  %v126_v32 = vld [vmem:[%s1264_s1 + $0x350] sm:$0xff]  ;;  %v129_v33 = vld [vmem:[%s1264_s1 + $0x368] sm:$0xff]  ;;  %v131_v35 = vld [vmem:[%s1264_s1 + $0x378] sm:$0xff]  ;;  %v463_v36 = vpack.c.bf16 %v43_v28, %v41_v27 }
  0x18   :  { %456 = vmatprep.subr.bf16.mxu1 %v455_v12  ;;  %v42_v38 = vld [vmem:[%s1264_s1 + $0xb0] sm:$0xff]  ;;  %v45_v39 = vld [vmem:[%s1264_s1 + $0xc8] sm:$0xff]  ;;  %v47_v40 = vld [vmem:[%s1264_s1 + $0xd8] sm:$0xff]  ;;  %v551_v42 = vpack.c.bf16 %v131_v35, %v129_v33 }
  0x19   :  { %530 = vmatpush1.bf16.msra.mxu0 %v529_v37  ;;  %v40_v37 = vld [vmem:[%s1264_s1 + $0xa0] sm:$0xff]  ;;  %v130_v44 = vld [vmem:[%s1264_s1 + $0x370] sm:$0xff]  ;;  %v133_v45 = vld [vmem:[%s1264_s1 + $0x388] sm:$0xff]  ;;  %v467_v48 = vpack.c.bf16 %v47_v40, %v45_v39 }
  0x1a   :  { %532 = vmatprep.subr.bf16.mxu0 %v531_v41  ;;  %v549_v41 = vpack.c.bf16 %v126_v32, %v124_v31  ;;  %v128_v43 = vld [vmem:[%s1264_s1 + $0x360] sm:$0xff]  ;;  %v465_v46 = vpack.c.bf16 %v42_v38, %v40_v37  ;;  %v135_v47 = vld [vmem:[%s1264_s1 + $0x398] sm:$0xff]  ;;  %v46_v50 = vld [vmem:[%s1264_s1 + $0xd0] sm:$0xff] }
  0x1b   :  { %458 = vmatpush1.bf16.msra.mxu1 %v457_v22  ;;  %v44_v49 = vld [vmem:[%s1264_s1 + $0xc0] sm:$0xff]  ;;  %v51_v52 = vld [vmem:[%s1264_s1 + $0xf8] sm:$0xff]  ;;  %v553_v53 = vpack.c.bf16 %v130_v44, %v128_v43  ;;  %v134_v56 = vld [vmem:[%s1264_s1 + $0x390] sm:$0xff] }
  0x1c   :  { %460 = vmatprep.subr.bf16.mxu1 %v459_v24  ;;  %v132_v55 = vld [vmem:[%s1264_s1 + $0x380] sm:$0xff]  ;;  %v137_v57 = vld [vmem:[%s1264_s1 + $0x3a8] sm:$0xff]  ;;  %v469_v58 = vpack.c.bf16 %v46_v50, %v44_v49  ;;  %v139_v59 = vld [vmem:[%s1264_s1 + $0x3b8] sm:$0xff] }
  0x1d   :  { %534 = vmatpush1.bf16.msra.mxu0 %v533_v51  ;;  %v49_v51 = vld [vmem:[%s1264_s1 + $0xe8] sm:$0xff]  ;;  %v48_v61 = vld [vmem:[%s1264_s1 + $0xe0] sm:$0xff]  ;;  %v50_v62 = vld [vmem:[%s1264_s1 + $0xf0] sm:$0xff]  ;;  %v557_v1 = vpack.c.bf16 %v134_v56, %v132_v55  ;;  %v559_v2 = vpack.c.bf16 %v139_v59, %v137_v57 }
  0x1e   :  { %536 = vmatprep.subr.bf16.mxu0 %v535_v54  ;;  %v555_v54 = vpack.c.bf16 %v135_v47, %v133_v45  ;;  %v471_v60 = vpack.c.bf16 %v51_v52, %v49_v51  ;;  %v53_v63 = vld [vmem:[%s1264_s1 + $0x108] sm:$0xff]  ;;  %v136_v3 = vld [vmem:[%s1264_s1 + $0x3a0] sm:$0xff]  ;;  %v138_v4 = vld [vmem:[%s1264_s1 + $0x3b0] sm:$0xff]  ;;  %v473_v6 = vpack.c.bf16 %v50_v62, %v48_v61 }
  0x1f   :  { %462 = vmatpush1.bf16.msra.mxu1 %v461_v34  ;;  %v143_v7 = vld [vmem:[%s1264_s1 + $0x3d8] sm:$0xff]  ;;  %v52_v9 = vld [vmem:[%s1264_s1 + $0x100] sm:$0xff]  ;;  %v54_v10 = vld [vmem:[%s1264_s1 + $0x110] sm:$0xff]  ;;  %v561_v13 = vpack.c.bf16 %v138_v4, %v136_v3 }
  0x20   :  { %464 = vmatprep.subr.bf16.mxu1 %v463_v36  ;;  %v57_v11 = vld [vmem:[%s1264_s1 + $0x128] sm:$0xff]  ;;  %v59_v12 = vld [vmem:[%s1264_s1 + $0x138] sm:$0xff]  ;;  %v142_v16 = vld [vmem:[%s1264_s1 + $0x3d0] sm:$0xff] }
  0x21   :  { %538 = vmatpush1.bf16.msra.mxu0 %v537_v0  ;;  %v55_v0 = vld [vmem:[%s1264_s1 + $0x118] sm:$0xff]  ;;  %v145_v17 = vld [vmem:[%s1264_s1 + $0x3e8] sm:$0xff]  ;;  %v479_v20 = vpack.c.bf16 %v59_v12, %v57_v11  ;;  %v56_v21 = vld [vmem:[%s1264_s1 + $0x120] sm:$0xff] }
  0x22   :  { %540 = vmatprep.subr.bf16.mxu0 %v539_v5  ;;  %v141_v5 = vld [vmem:[%s1264_s1 + $0x3c8] sm:$0xff]  ;;  %v475_v8 = vpack.c.bf16 %v55_v0, %v53_v63  ;;  %v147_v19 = vld [vmem:[%s1264_s1 + $0x3f8] sm:$0xff]  ;;  %v58_v22 = vld [vmem:[%s1264_s1 + $0x130] sm:$0xff] }
  0x23   :  { %466 = vmatpush1.bf16.msra.mxu1 %v465_v46  ;;  %v563_v14 = vpack.c.bf16 %v143_v7, %v141_v5  ;;  %v61_v23 = vld [vmem:[%s1264_s1 + $0x148] sm:$0xff]  ;;  %v63_v24 = vld [vmem:[%s1264_s1 + $0x158] sm:$0xff]  ;;  %v567_v26 = vpack.c.bf16 %v147_v19, %v145_v17  ;;  %v144_v27 = vld [vmem:[%s1264_s1 + $0x3e0] sm:$0xff] }
  0x24   :  { %468 = vmatprep.subr.bf16.mxu1 %v467_v48  ;;  %v146_v28 = vld [vmem:[%s1264_s1 + $0x3f0] sm:$0xff]  ;;  %v151_v31 = vld [vmem:[%s1264_s1 + $0x418] sm:$0xff]  ;;  %v483_v32 = vpack.c.bf16 %v63_v24, %v61_v23  ;;  %v60_v33 = vld [vmem:[%s1264_s1 + $0x140] sm:$0xff] }
  0x25   :  { %542 = vmatpush1.bf16.msra.mxu0 %v541_v15  ;;  %v140_v15 = vld [vmem:[%s1264_s1 + $0x3c0] sm:$0xff]  ;;  %v62_v34 = vld [vmem:[%s1264_s1 + $0x150] sm:$0xff]  ;;  %v65_v35 = vld [vmem:[%s1264_s1 + $0x168] sm:$0xff]  ;;  %v569_v37 = vpack.c.bf16 %v146_v28, %v144_v27 }
  0x26   :  { %544 = vmatprep.subr.bf16.mxu0 %v543_v18  ;;  %v477_v18 = vpack.c.bf16 %v54_v10, %v52_v9  ;;  %v565_v25 = vpack.c.bf16 %v142_v16, %v140_v15  ;;  %v67_v36 = vld [vmem:[%s1264_s1 + $0x178] sm:$0xff]  ;;  %v148_v39 = vld [vmem:[%s1264_s1 + $0x400] sm:$0xff]  ;;  %v150_v40 = vld [vmem:[%s1264_s1 + $0x410] sm:$0xff] }
  0x27   :  { %470 = vmatpush1.bf16.msra.mxu1 %v469_v58  ;;  %v155_v43 = vld [vmem:[%s1264_s1 + $0x438] sm:$0xff]  ;;  %v487_v44 = vpack.c.bf16 %v67_v36, %v65_v35  ;;  %v64_v45 = vld [vmem:[%s1264_s1 + $0x160] sm:$0xff]  ;;  %v66_v46 = vld [vmem:[%s1264_s1 + $0x170] sm:$0xff]  ;;  %v573_v51 = vpack.c.bf16 %v150_v40, %v148_v39 }
  0x28   :  { %472 = vmatprep.subr.bf16.mxu1 %v471_v60  ;;  %v69_v47 = vld [vmem:[%s1264_s1 + $0x188] sm:$0xff]  ;;  %v71_v48 = vld [vmem:[%s1264_s1 + $0x198] sm:$0xff]  ;;  %v16_v50 = vld [vmem:[%s1265_s0 + $0x10] sm:$0xff]  ;;  %v489_v56 = vpack.c.bf16 %v66_v46, %v64_v45 }
  0x29   :  { %546 = vmatpush1.bf16.msra.mxu0 %v545_v29  ;;  %v149_v29 = vld [vmem:[%s1264_s1 + $0x408] sm:$0xff]  ;;  %v152_v52 = vld [vmem:[%s1264_s1 + $0x420] sm:$0xff]  ;;  %v159_v58 = vld [vmem:[%s1264_s1 + $0x458] sm:$0xff]  ;;  %v491_v59 = vpack.c.bf16 %v71_v48, %v69_v47 }
  0x2a   :  { %548 = vmatprep.subr.bf16.mxu0 %v547_v30  ;;  %v481_v30 = vpack.c.bf16 %v58_v22, %v56_v21  ;;  %v571_v38 = vpack.c.bf16 %v151_v31, %v149_v29  ;;  %v15_v49 = vld [vmem:[%s1265_s0 + $0x8] sm:$0xff]  ;;  %v68_v60 = vld [vmem:[%s1264_s1 + $0x180] sm:$0xff]  ;;  %v70_v61 = vld [vmem:[%s1264_s1 + $0x190] sm:$0xff] }
  0x2b   :  { %474 = vmatpush1.bf16.msra.mxu1 %v473_v6  ;;  %288 = vmatprep.mubr.f32.mxu1 %v15_v49  ;;  %v157_v55 = vld [vmem:[%s1264_s1 + $0x448] sm:$0xff]  ;;  %v75_v63 = vld [vmem:[%s1264_s1 + $0x1b8] sm:$0xff]  ;;  %v158_v3 = vld [vmem:[%s1264_s1 + $0x450] sm:$0xff]  ;;  %v493_v5 = vpack.c.bf16 %v70_v61, %v68_v60 }
  0x2c   :  { %476 = vmatprep.subr.bf16.mxu1 %v475_v8  ;;  %v19_v57 = vld [vmem:[%s1265_s0 + $0x28] sm:$0xff]  ;;  %v163_v6 = vld [vmem:[%s1264_s1 + $0x478] sm:$0xff]  ;;  %v72_v8 = vld [vmem:[%s1264_s1 + $0x1a0] sm:$0xff] }
  0x2d   :  { %550 = vmatpush1.bf16.msra.mxu0 %v549_v41  ;;  %v153_v41 = vld [vmem:[%s1264_s1 + $0x428] sm:$0xff]  ;;  %v74_v9 = vld [vmem:[%s1264_s1 + $0x1b0] sm:$0xff]  ;;  %v79_v11 = vld [vmem:[%s1264_s1 + $0x1d8] sm:$0xff] }
  0x2e   :  { %552 = vmatprep.subr.bf16.mxu0 %v551_v42  ;;  %v485_v42 = vpack.c.bf16 %v62_v34, %v60_v33  ;;  %v73_v62 = vld [vmem:[%s1264_s1 + $0x1a8] sm:$0xff]  ;;  %v162_v15 = vld [vmem:[%s1264_s1 + $0x470] sm:$0xff]  ;;  %v497_v17 = vpack.c.bf16 %v74_v9, %v72_v8  ;;  %v83_v23 = vld [vmem:[%s1264_s1 + $0x1f8] sm:$0xff] }
  0x2f   :  { %478 = vmatpush1.bf16.msra.mxu1 %v477_v18  ;;  %v161_v4 = vld [vmem:[%s1264_s1 + $0x468] sm:$0xff]  ;;  %v495_v7 = vpack.c.bf16 %v75_v63, %v73_v62  ;;  %v167_v18 = vld [vmem:[%s1264_s1 + $0x498] sm:$0xff]  ;;  %v78_v21 = vld [vmem:[%s1264_s1 + $0x1d0] sm:$0xff] }
  0x30   :  { %480 = vmatprep.subr.bf16.mxu1 %v479_v20  ;;  %v77_v10 = vld [vmem:[%s1264_s1 + $0x1c8] sm:$0xff]  ;;  %v76_v20 = vld [vmem:[%s1264_s1 + $0x1c0] sm:$0xff]  ;;  %v166_v27 = vld [vmem:[%s1264_s1 + $0x490] sm:$0xff] }
  0x31   :  { %554 = vmatpush1.bf16.msra.mxu0 %v553_v53  ;;  %v575_v53 = vpack.c.bf16 %v155_v43, %v153_v41  ;;  %v165_v16 = vld [vmem:[%s1264_s1 + $0x488] sm:$0xff]  ;;  %v499_v19 = vpack.c.bf16 %v79_v11, %v77_v10  ;;  %v501_v29 = vpack.c.bf16 %v78_v21, %v76_v20  ;;  %v82_v33 = vld [vmem:[%s1264_s1 + $0x1f0] sm:$0xff]  ;;  %v168_v36 = vld [vmem:[%s1264_s1 + $0x4a0] sm:$0xff] }
  0x32   :  { %556 = vmatprep.subr.bf16.mxu0 %v555_v54  ;;  %v154_v54 = vld [vmem:[%s1264_s1 + $0x430] sm:$0xff]  ;;  %v81_v22 = vld [vmem:[%s1264_s1 + $0x1e8] sm:$0xff]  ;;  %v175_v40 = vld [vmem:[%s1264_s1 + $0x4d8] sm:$0xff] }
  0x33   :  { %482 = vmatpush1.bf16.msra.mxu1 %v481_v30  ;;  %v577_v0 = vpack.c.bf16 %v154_v54, %v152_v52  ;;  %v169_v28 = vld [vmem:[%s1264_s1 + $0x4a8] sm:$0xff]  ;;  %v171_v30 = vld [vmem:[%s1264_s1 + $0x4b8] sm:$0xff]  ;;  %v503_v31 = vpack.c.bf16 %v83_v23, %v81_v22  ;;  %v172_v43 = vld [vmem:[%s1264_s1 + $0x4c0] sm:$0xff] }
  0x34   :  { %484 = vmatprep.subr.bf16.mxu1 %v483_v32  ;;  %v80_v32 = vld [vmem:[%s1264_s1 + $0x1e0] sm:$0xff]  ;;  %v591_v35 = vpack.c.bf16 %v171_v30, %v169_v28  ;;  %v173_v39 = vld [vmem:[%s1264_s1 + $0x4c8] sm:$0xff]  ;;  %v179_v47 = vld [vmem:[%s1264_s1 + $0x4f8] sm:$0xff] }
  0x35   :  { %558 = vmatpush1.bf16.msra.mxu0 %v557_v1  ;;  %v579_v1 = vpack.c.bf16 %v159_v58, %v157_v55  ;;  %v14_v45 = vld [vmem:[%s1265_s0] sm:$0xff]  ;;  %v177_v46 = vld [vmem:[%s1264_s1 + $0x4e8] sm:$0xff]  ;;  %v186_v63 = vld [vmem:[%s1264_s1 + $0x530] sm:$0xff] }
  0x36   :  { %560 = vmatprep.subr.bf16.mxu0 %v559_v2  ;;  %v156_v2 = vld [vmem:[%s1264_s1 + $0x440] sm:$0xff]  ;;  %v599_v49 = vpack.c.bf16 %v179_v47, %v177_v46  ;;  %v181_v52 = vld [vmem:[%s1264_s1 + $0x508] sm:$0xff]  ;;  %v194_v11 = vld [vmem:[%s1264_s1 + $0x570] sm:$0xff] }
  0x37   :  { %486 = vmatpush1.bf16.msra.mxu1 %v485_v42  ;;  %v581_v12 = vpack.c.bf16 %v158_v3, %v156_v2  ;;  %v595_v42 = vpack.c.bf16 %v175_v40, %v173_v39  ;;  %v185_v58 = vld [vmem:[%s1264_s1 + $0x528] sm:$0xff]  ;;  %v184_v62 = vld [vmem:[%s1264_s1 + $0x520] sm:$0xff]  ;;  %v202_v23 = vld [vmem:[%s1264_s1 + $0x5b0] sm:$0xff]  ;;  %v214_v40 = vlaneseq }
  0x38   :  { %488 = vmatprep.subr.bf16.mxu1 %v487_v44  ;;  %v174_v44 = vld [vmem:[%s1264_s1 + $0x4d0] sm:$0xff]  ;;  %v609_v2 = vpack.c.bf16 %v186_v63, %v184_v62  ;;  %v192_v10 = vld [vmem:[%s1264_s1 + $0x560] sm:$0xff]  ;;  %v209_v30 = vld [vmem:[%s1264_s1 + $0x5e8] sm:$0xff] }
  0x39   :  { %562 = vmatpush1.bf16.msra.mxu0 %v561_v13  ;;  %v583_v13 = vpack.c.bf16 %v163_v6, %v161_v4  ;;  %v597_v48 = vpack.c.bf16 %v174_v44, %v172_v43  ;;  %v188_v4 = vld [vmem:[%s1264_s1 + $0x540] sm:$0xff]  ;;  %v193_v6 = vld [vmem:[%s1264_s1 + $0x568] sm:$0xff] }
  0x3a   :  { %564 = vmatprep.subr.bf16.mxu0 %v563_v14  ;;  %v160_v14 = vld [vmem:[%s1264_s1 + $0x460] sm:$0xff] }
  0x3b   :  { %490 = vmatpush1.bf16.msra.mxu1 %v489_v56  ;;  %v585_v24 = vpack.c.bf16 %v162_v15, %v160_v14  ;;  %v180_v56 = vld [vmem:[%s1264_s1 + $0x500] sm:$0xff]  ;;  %v617_v14 = vpack.c.bf16 %v194_v11, %v192_v10 }
  0x3c   :  { %492 = vmatprep.subr.bf16.mxu1 %v491_v59  ;;  %v187_v59 = vld [vmem:[%s1264_s1 + $0x538] sm:$0xff]  ;;  %v200_v22 = vld [vmem:[%s1264_s1 + $0x5a0] sm:$0xff] }
  0x3d   :  { %566 = vmatpush1.bf16.msra.mxu0 %v565_v25  ;;  %v587_v25 = vpack.c.bf16 %v167_v18, %v165_v16  ;;  %v607_v61 = vpack.c.bf16 %v187_v59, %v185_v58  ;;  %v196_v16 = vld [vmem:[%s1264_s1 + $0x580] sm:$0xff]  ;;  %v201_v18 = vld [vmem:[%s1264_s1 + $0x5a8] sm:$0xff] }
  0x3e   :  { %568 = vmatprep.subr.bf16.mxu0 %v567_v26  ;;  %v164_v26 = vld [vmem:[%s1264_s1 + $0x480] sm:$0xff] }
  0x3f   :  { %494 = vmatpush1.bf16.msra.mxu1 %v493_v5  ;;  %v589_v34 = vpack.c.bf16 %v166_v27, %v164_v26  ;;  %v190_v5 = vld [vmem:[%s1264_s1 + $0x550] sm:$0xff]  ;;  %v625_v26 = vpack.c.bf16 %v202_v23, %v200_v22  ;;  %v204_v28 = vld [vmem:[%s1264_s1 + $0x5c0] sm:$0xff] }
  0x40   :  { %496 = vmatprep.subr.bf16.mxu1 %v495_v7  ;;  %v195_v7 = vld [vmem:[%s1264_s1 + $0x578] sm:$0xff]  ;;  %v613_v8 = vpack.c.bf16 %v190_v5, %v188_v4  ;;  %v212_v43 = vld [vmem:[%s1266_s2] sm:$0x3] }
  0x41   :  { %570 = vmatpush1.bf16.msra.mxu0 %v569_v37  ;;  %v170_v37 = vld [vmem:[%s1264_s1 + $0x4b0] sm:$0xff]  ;;  %v615_v9 = vpack.c.bf16 %v195_v7, %v193_v6 }
  0x42   :  { %572 = vmatprep.subr.bf16.mxu0 %v571_v38  ;;  %v505_v38 = vpack.c.bf16 %v82_v33, %v80_v32  ;;  %v593_v41 = vpack.c.bf16 %v170_v37, %v168_v36  ;;  %v18_v37 = vld [vmem:[%s1265_s0 + $0x20] sm:$0xff] }
  0x43   :  { %498 = vmatpush1.bf16.msra.mxu1 %v497_v17  ;;  %v198_v17 = vld [vmem:[%s1264_s1 + $0x590] sm:$0xff] }
  0x44   :  { %360 = vmatmul.mubr.f32.vlgmr.msra.gmra.mrb[0].mxu0 %v16_v50  ;;  %500 = vmatprep.subr.bf16.mxu1 %v499_v19  ;;  %v176_v50 = vld [vmem:[%s1264_s1 + $0x4e0] sm:$0xff]  ;;  %v203_v19 = vld [vmem:[%s1264_s1 + $0x5b8] sm:$0xff]  ;;  %v621_v20 = vpack.c.bf16 %v198_v17, %v196_v16 }
  0x45   :  { %574 = vmatpush1.bf16.msra.mxu0 %v573_v51  ;;  %430 = vmatprep.mubr.f32.mxu0 %v19_v57  ;;  %v178_v51 = vld [vmem:[%s1264_s1 + $0x4f0] sm:$0xff]  ;;  %v623_v21 = vpack.c.bf16 %v203_v19, %v201_v18 }
  0x46   :  { %576 = vmatprep.subr.bf16.mxu0 %v575_v53  ;;  %v183_v53 = vld [vmem:[%s1264_s1 + $0x518] sm:$0xff]  ;;  %v601_v54 = vpack.c.bf16 %v178_v51, %v176_v50  ;;  %v182_v57 = vld [vmem:[%s1264_s1 + $0x510] sm:$0xff] }
  0x47   :  { %502 = vmatpush1.bf16.msra.mxu1 %v501_v29  ;;  %v603_v55 = vpack.c.bf16 %v183_v53, %v181_v52  ;;  %v605_v60 = vpack.c.bf16 %v182_v57, %v180_v56  ;;  %v206_v29 = vld [vmem:[%s1264_s1 + $0x5d0] sm:$0xff] }
  0x48   :  { %504 = vmatprep.subr.bf16.mxu1 %v503_v31  ;;  %v211_v31 = vld [vmem:[%s1264_s1 + $0x5f8] sm:$0xff]  ;;  %v629_v32 = vpack.c.bf16 %v206_v29, %v204_v28 }
  0x49   :  { %578 = vmatpush1.bf16.msra.mxu0 %v577_v0  ;;  %v189_v0 = vld [vmem:[%s1264_s1 + $0x548] sm:$0xff]  ;;  %v631_v33 = vpack.c.bf16 %v211_v31, %v209_v30 }
  0x4a   :  { %580 = vmatprep.subr.bf16.mxu0 %v579_v1  ;;  %v191_v1 = vld [vmem:[%s1264_s1 + $0x558] sm:$0xff] }
  0x4b   :  { %506 = vmatpush1.bf16.msra.mxu1 %v505_v38  ;;  %v611_v3 = vpack.c.bf16 %v191_v1, %v189_v0 }
  0x4d   :  { %582 = vmatpush1.bf16.msra.mxu0 %v581_v12  ;;  %v197_v12 = vld [vmem:[%s1264_s1 + $0x588] sm:$0xff] }
  0x4e   :  { %584 = vmatprep.subr.bf16.mxu0 %v583_v13  ;;  %289 = vmatmul.mubr.f32.vlgmr.msra.gmra.mrb[0].mxu1 %v14_v45  ;;  %v199_v13 = vld [vmem:[%s1264_s1 + $0x598] sm:$0xff] }
  0x4f   :  { %v619_v15 = vpack.c.bf16 %v199_v13, %v197_v12 }
  0x51   :  { %586 = vmatpush1.bf16.msra.mxu0 %v585_v24  ;;  %v205_v24 = vld [vmem:[%s1264_s1 + $0x5c8] sm:$0xff] }
  0x52   :  { %588 = vmatprep.subr.bf16.mxu0 %v587_v25  ;;  %v207_v25 = vld [vmem:[%s1264_s1 + $0x5d8] sm:$0xff] }
  0x53   :  { %v627_v27 = vpack.c.bf16 %v207_v25, %v205_v24 }
  0x55   :  { %590 = vmatpush1.bf16.msra.mxu0 %v589_v34  ;;  %v208_v34 = vld [vmem:[%s1264_s1 + $0x5e0] sm:$0xff] }
  0x56   :  { %592 = vmatprep.subr.bf16.mxu0 %v591_v35  ;;  %v210_v35 = vld [vmem:[%s1264_s1 + $0x5f0] sm:$0xff] }
  0x57   :  { %v633_v36 = vpack.c.bf16 %v210_v35, %v208_v34 }
  0x59   :  { %594 = vmatpush1.bf16.msra.mxu0 %v593_v41  ;;  %v215_v41 = vshrl.u32 %v214_v40, 7 }
  0x5a   :  { %596 = vmatprep.subr.bf16.mxu0 %v595_v42 }
  0x5b   :  { %v216_v42 = vsub.s32 0, %v215_v41  ;;  %v220_v44 = vsub.s32 1, %v215_v41 }
  0x5d   :  { %598 = vmatpush1.bf16.msra.mxu0 %v597_v48  ;;  %v217_v45 = vrot.slane %v212_v43, %v216_v42  ;;  %v221_v46 = vrot.slane %v212_v43, %v220_v44 }
  0x5e   :  { %600 = vmatprep.subr.bf16.mxu0 %v599_v49 }
  0x61   :  { %602 = vmatpush1.bf16.msra.mxu0 %v601_v54 }
  0x62   :  { %604 = vmatprep.subr.bf16.mxu0 %v603_v55 }
  0x65   :  { %606 = vmatpush1.bf16.msra.mxu0 %v605_v60 }
  0x66   :  { %608 = vmatprep.subr.bf16.mxu0 %v607_v61 }
  0x69   :  { %610 = vmatpush1.bf16.msra.mxu0 %v609_v2 }
  0x6a   :  { %612 = vmatprep.subr.bf16.mxu0 %v611_v3 }
  0x6d   :  { %614 = vmatpush1.bf16.msra.mxu0 %v613_v8 }
  0x6e   :  { %616 = vmatprep.subr.bf16.mxu0 %v615_v9 }
  0x71   :  { %618 = vmatpush1.bf16.msra.mxu0 %v617_v14 }
  0x72   :  { %620 = vmatprep.subr.bf16.mxu0 %v619_v15 }
  0x75   :  { %622 = vmatpush1.bf16.msra.mxu0 %v621_v20 }
  0x76   :  { %624 = vmatprep.subr.bf16.mxu0 %v623_v21 }
  0x79   :  { %626 = vmatpush1.bf16.msra.mxu0 %v625_v26 }
  0x7a   :  { %628 = vmatprep.subr.bf16.mxu0 %v627_v27 }
  0x7d   :  { %630 = vmatpush1.bf16.msra.mxu0 %v629_v32 }
  0x7e   :  { %632 = vmatprep.subr.bf16.mxu0 %v631_v33 }
  0x81   :  { %634 = vmatpush1.bf16.msra.mxu0 %v633_v36 }
  0x84   :  { %431 = vmatmul.mubr.f32.vlgmr.msra.gmra.mrb[0].mxu0 %v18_v37 }
 0x121   :  { %v290_v38 = vpop.f32.mrb[0].mxu1 }
 0x122   :  { %v292_v39 = vpop.f32.mrb[1].mxu1  ;;  %v291_v47 = vadd.f32 %v290_v38, %v217_v45 }
 0x123   :  { %v293_v48 = vadd.f32 %v292_v39, %v221_v46 }
 0x157   :  { %v432_v49 = vpop.f32.mrb[0].mxu0 }
 0x158   :  { %v636_v50 = vadd.f32 %v432_v49, %v291_v47  ;;  %v434_v51 = vpop.f32.mrb[1].mxu0 }
 0x159   :  { %v638_v52 = vadd.f32 %v434_v51, %v293_v48 }
 0x15a   :  { %437 = vst [vmem:[%s1267_s3] sm:$0xff] %v636_v50 }
 0x15b   :  { %438 = vst [vmem:[%s1267_s3 + $0x8] sm:$0xff] %v638_v52 }

</bundles_post_ra>
